<compile_context>
chip_gen: v7x
topology: tpu7x:2x2x1
jax: 0.10.0
libtpu: 0.0.40
codegen_flags: <defaults>
</compile_context>

<pallas_src>
import jax
import jax.numpy as jnp
from jax.experimental import pallas as pl
from jax.experimental.pallas import tpu as pltpu


# --------------------------------------------------------------------------
# Fused kernel: conv (as matmul) + ReLU + time-max + concat + FC
# --------------------------------------------------------------------------
def _make_fused_kernel(kernel_sizes, seq_len, out_channel):
    kernel_sizes = tuple(int(k) for k in kernel_sizes)
    A = int(seq_len)
    C = int(out_channel)

    def kernel(x_ref, conv_w_ref, conv_b_ref, fc_w_ref, fc_b_ref, o_ref):
        # x_ref:      (tn, A, L)
        # conv_w_ref: (L, sum(ks) * C)    one C-wide column block per shift
        # conv_b_ref: (1, len(ks) * C)    f32
        # fc_w_ref:   (len(ks) * C, class_num)
        # fc_b_ref:   (1, class_num)      f32
        # o_ref:      (tn, class_num)     f32
        x = x_ref[...]
        w = conv_w_ref[...]

        # Single tall contraction over the embedding dim for ALL branches and
        # ALL shifts at once (best MXU fill available at these widths).
        z = jnp.einsum('nal,lf->naf', x, w,
                       preferred_element_type=jnp.float32)   # (tn, A, sum(ks)*C)

        b_all = conv_b_ref[...]                               # (1, nks*C), f32
        fc_w = fc_w_ref[...].astype(jnp.float32)              # (nks*C, cls)

        col = 0    # column cursor into z's last dim (one C block per shift)
        fcol = 0   # column cursor into the concatenated feature space
        out_acc = None
        for ks in kernel_sizes:
            T = A - ks + 1
            # conv output for this branch = sum over shifts of z slices
            acc = z[:, 0:T, col:col + C]
            col += C
            for r in range(1, ks):
                acc = acc + z[:, r:r + T, col:col + C]
                col += C
            # max over time, then (hoisted) bias + ReLU  -- bit-identical to
            # max_t(relu(s_t + b)) since b is per-channel and ReLU monotone.
            m = jnp.max(acc, axis=1)                               # (tn, C)
            feat = jnp.maximum(m + b_all[:, fcol:fcol + C], 0.0)   # (tn, C)
            # final FC contribution of this branch (decomposed concat @ W)
            contrib = jnp.dot(feat, fc_w[fcol:fcol + C, :],
                              preferred_element_type=jnp.float32)  # (tn, cls)
            out_acc = contrib if out_acc is None else out_acc + contrib
            fcol += C

        # TODO(synk): dropout is eval-mode identity here (PyTorch default is
        #             training-mode p=0.5 stochastic dropout).
        o_ref[...] = (out_acc + fc_b_ref[...]).astype(o_ref.dtype)

    return kernel


def _pick_batch_tile(n, seq_len, emb_dim, itemsize,
                     vmem_budget_bytes=8 * 1024 * 1024):
    """Largest batch tile whose double-buffered input stays within a
    conservative VMEM budget (fits v7x's 64 MiB as well as v5e/v6e)."""
    per_row = seq_len * emb_dim * itemsize
    cap = max(8, vmem_budget_bytes // (2 * per_row))
    cap = min(cap, 1024)
    if n <= cap:
        return n
    return max(8, (cap // 8) * 8)   # multiple of 8 for the output block


# --------------------------------------------------------------------------
# Module wrapper (parameter setup + pallas_call plumbing)
# --------------------------------------------------------------------------
class ConvModulePallas:
    """Pallas TPU implementation of ConvModule.forward (eval mode)."""

    def __init__(self, out_channel, kernel_sizes, emb_dim, class_num=1,
                 seed=0, compute_dtype=jnp.float32):
        self.out_channel = int(out_channel)
        self.kernel_sizes = tuple(int(k) for k in kernel_sizes)
        self.emb_dim = int(emb_dim)
        self.class_num = int(class_num)
        self.compute_dtype = compute_dtype

        key = jax.random.PRNGKey(seed)
        w_cols = []   # one (L, C) block per (kernel_size, shift)
        b_parts = []
        for ks in self.kernel_sizes:
            key, kw, kb = jax.random.split(key, 3)
            fan_in = 1 * ks * self.emb_dim
            bound = fan_in ** -0.5
            # PyTorch Conv2d weight shape: (C, 1, ks, emb_dim)
            w = jax.random.uniform(kw, (self.out_channel, 1, ks, self.emb_dim),
                                   jnp.float32, -bound, bound)
            b = jax.random.uniform(kb, (self.out_channel,),
                                   jnp.float32, -bound, bound)
            for r in range(ks):
                w_cols.append(w[:, 0, r, :].T)          # (emb_dim, C)
            b_parts.append(b)
        # (L, sum(ks)*C): per-shift conv weight columns, branch-major order.
        self.conv_w = jnp.concatenate(w_cols, axis=1).astype(compute_dtype)
        # (1, len(ks)*C): per-branch biases concatenated in branch order.
        self.conv_b = jnp.concatenate(b_parts).reshape(1, -1).astype(jnp.float32)

        f_in = len(self.kernel_sizes) * self.out_channel
        key, kw, kb = jax.random.split(key, 3)
        bound = f_in ** -0.5
        # PyTorch Linear weight: (class_num, f_in); transposed for x @ W.T.
        self.fc_w = jax.random.uniform(kw, (self.class_num, f_in),
                                       jnp.float32, -bound, bound
                                       ).T.astype(compute_dtype)
        self.fc_b = jax.random.uniform(kb, (self.class_num,),
                                       jnp.float32, -bound, bound
                                       ).reshape(1, self.class_num)

    def __call__(self, x):
        n, a, l = x.shape
        assert l == self.emb_dim
        assert a >= max(self.kernel_sizes)
        x = x.astype(self.compute_dtype)

        f_cols = self.conv_w.shape[1]           # sum(ks) * C
        f_feat = self.conv_b.shape[1]           # len(ks) * C
        itemsize = jnp.dtype(self.compute_dtype).itemsize
        tn = _pick_batch_tile(n, a, l, itemsize)
        grid = (pl.cdiv(n, tn),)

        kernel = _make_fused_kernel(self.kernel_sizes, a, self.out_channel)
        return pl.pallas_call(
            kernel,
            out_shape=jax.ShapeDtypeStruct((n, self.class_num), jnp.float32),
            grid_spec=pltpu.PrefetchScalarGridSpec(
                num_scalar_prefetch=0,
                grid=grid,
                in_specs=[
                    pl.BlockSpec((tn, a, l), lambda i: (i, 0, 0)),
                    pl.BlockSpec((l, f_cols), lambda i: (0, 0)),
                    pl.BlockSpec((1, f_feat), lambda i: (0, 0)),
                    pl.BlockSpec((f_feat, self.class_num), lambda i: (0, 0)),
                    pl.BlockSpec((1, self.class_num), lambda i: (0, 0)),
                ],
                out_specs=pl.BlockSpec((tn, self.class_num), lambda i: (i, 0)),
            ),
            compiler_params=pltpu.CompilerParams(
                dimension_semantics=("parallel",),
                vmem_limit_bytes=32 * 1024 * 1024,
            ),
        )(x, self.conv_w, self.conv_b, self.fc_w, self.fc_b)


if __name__ == "__main__":
    # Small shapes consistent with forward: (N, A, L) = (2, 8, 32)
    N, A, L = 2, 8, 32
    out_channel = 4
    kernel_sizes = (2, 3, 4)
    class_num = 1

    key = jax.random.PRNGKey(0)
    x = jax.random.normal(key, (N, A, L), dtype=jnp.float32)

    # float32 to match PyTorch numerics; pass compute_dtype=jnp.bfloat16 for
    # the memory-bound bf16 path recommended on v6e/v7x.
    module = ConvModulePallas(out_channel, kernel_sizes, L, class_num, seed=0)
    out = module(x)
    out = jax.block_until_ready(out)
    assert out.shape == (N, class_num), out.shape
    print("KERNEL_OK")
</pallas_src>

<mosaic_0001>
module attributes {stable_mosaic.version = 11 : i64} {
  func.func @kernel(%arg0: i32, %arg1: memref<2x8x32xf32, #tpu.memory_space<vmem>>, %arg2: memref<32x36xf32, #tpu.memory_space<vmem>>, %arg3: memref<1x12xf32, #tpu.memory_space<vmem>>, %arg4: memref<12x1xf32, #tpu.memory_space<vmem>>, %arg5: memref<1x1xf32, #tpu.memory_space<vmem>>, %arg6: memref<2x1xf32, #tpu.memory_space<vmem>>) attributes {dimension_semantics = [#tpu.dimension_semantics<parallel>], iteration_bounds = array<i64: 1>, scalar_prefetch = 0 : i64, scratch_operands = 0 : i64, tpu.core_type = #tpu.core_type<tc>, window_params = [{transform_indices = @transform_0, window_bounds = array<i64: 2, 8, 32>}, {pipeline_mode = #tpu.pipeline_mode<synchronous>, transform_indices = @transform_1, window_bounds = array<i64: 32, 36>}, {pipeline_mode = #tpu.pipeline_mode<synchronous>, transform_indices = @transform_2, window_bounds = array<i64: 1, 12>}, {pipeline_mode = #tpu.pipeline_mode<synchronous>, transform_indices = @transform_3, window_bounds = array<i64: 12, 1>}, {pipeline_mode = #tpu.pipeline_mode<synchronous>, transform_indices = @transform_4, window_bounds = array<i64: 1, 1>}, {transform_indices = @transform_5, window_bounds = array<i64: 2, 1>}]} {
    %c0 = arith.constant 0 : index
    %c0_0 = arith.constant 0 : index
    %c0_1 = arith.constant 0 : index
    %0 = vector.load %arg1[%c0, %c0_0, %c0_1] : memref<2x8x32xf32, #tpu.memory_space<vmem>>, vector<2x8x32xf32>
    %c0_2 = arith.constant 0 : index
    %c0_3 = arith.constant 0 : index
    %1 = vector.load %arg2[%c0_2, %c0_3] : memref<32x36xf32, #tpu.memory_space<vmem>>, vector<32x36xf32>
    "tpu.trace_start"() <{level = 10 : i32, message = "nal,lf->naf"}> : () -> ()
    %cst = arith.constant dense<0.000000e+00> : vector<2x8x36xf32>
    %2 = tpu.matmul %0, %1, %cst {dimension_numbers = #tpu.dot_dimension_numbers<[2], [0], [0, 1], [1], [0, 0, 0, 1, 1, 1], [], []>} : vector<2x8x32xf32>, vector<32x36xf32>, vector<2x8x36xf32> -> vector<2x8x36xf32>
    "tpu.trace_stop"() : () -> ()
    %c0_4 = arith.constant 0 : index
    %c0_5 = arith.constant 0 : index
    %3 = vector.load %arg3[%c0_4, %c0_5] : memref<1x12xf32, #tpu.memory_space<vmem>>, vector<1x12xf32>
    %c0_6 = arith.constant 0 : index
    %c0_7 = arith.constant 0 : index
    %4 = vector.load %arg4[%c0_6, %c0_7] : memref<12x1xf32, #tpu.memory_space<vmem>>, vector<12x1xf32>
    %5 = vector.extract_strided_slice %2 {offsets = [0, 0, 0], sizes = [2, 7, 4], strides = [1, 1, 1]} : vector<2x8x36xf32> to vector<2x7x4xf32>
    %6 = vector.extract_strided_slice %2 {offsets = [0, 1, 4], sizes = [2, 7, 4], strides = [1, 1, 1]} : vector<2x8x36xf32> to vector<2x7x4xf32>
    %7 = arith.addf %5, %6 : vector<2x7x4xf32>
    %cst_8 = arith.constant dense<0xFF800000> : vector<2x4xf32>
    %8 = vector.multi_reduction <maximumf>, %7, %cst_8 [1] : vector<2x7x4xf32> to vector<2x4xf32>
    %9 = vector.extract_strided_slice %3 {offsets = [0, 0], sizes = [1, 4], strides = [1, 1]} : vector<1x12xf32> to vector<1x4xf32>
    %10 = vector.broadcast %9 : vector<1x4xf32> to vector<2x4xf32>
    %11 = arith.addf %8, %10 : vector<2x4xf32>
    %cst_9 = arith.constant 0.000000e+00 : f32
    %12 = vector.broadcast %cst_9 : f32 to vector<2x4xf32>
    %13 = arith.maximumf %11, %12 : vector<2x4xf32>
    %14 = vector.extract_strided_slice %4 {offsets = [0, 0], sizes = [4, 1], strides = [1, 1]} : vector<12x1xf32> to vector<4x1xf32>
    %cst_10 = arith.constant dense<0.000000e+00> : vector<2x1xf32>
    %15 = tpu.matmul %13, %14, %cst_10 {dimension_numbers = #tpu.dot_dimension_numbers<[1], [0], [0], [1], [0, 0, 1, 1], [], []>} : vector<2x4xf32>, vector<4x1xf32>, vector<2x1xf32> -> vector<2x1xf32>
    %16 = vector.extract_strided_slice %2 {offsets = [0, 0, 8], sizes = [2, 6, 4], strides = [1, 1, 1]} : vector<2x8x36xf32> to vector<2x6x4xf32>
    %17 = vector.extract_strided_slice %2 {offsets = [0, 1, 12], sizes = [2, 6, 4], strides = [1, 1, 1]} : vector<2x8x36xf32> to vector<2x6x4xf32>
    %18 = arith.addf %16, %17 : vector<2x6x4xf32>
    %19 = vector.extract_strided_slice %2 {offsets = [0, 2, 16], sizes = [2, 6, 4], strides = [1, 1, 1]} : vector<2x8x36xf32> to vector<2x6x4xf32>
    %20 = arith.addf %18, %19 : vector<2x6x4xf32>
    %cst_11 = arith.constant dense<0xFF800000> : vector<2x4xf32>
    %21 = vector.multi_reduction <maximumf>, %20, %cst_11 [1] : vector<2x6x4xf32> to vector<2x4xf32>
    %22 = vector.extract_strided_slice %3 {offsets = [0, 4], sizes = [1, 4], strides = [1, 1]} : vector<1x12xf32> to vector<1x4xf32>
    %23 = vector.broadcast %22 : vector<1x4xf32> to vector<2x4xf32>
    %24 = arith.addf %21, %23 : vector<2x4xf32>
    %cst_12 = arith.constant 0.000000e+00 : f32
    %25 = vector.broadcast %cst_12 : f32 to vector<2x4xf32>
    %26 = arith.maximumf %24, %25 : vector<2x4xf32>
    %27 = vector.extract_strided_slice %4 {offsets = [4, 0], sizes = [4, 1], strides = [1, 1]} : vector<12x1xf32> to vector<4x1xf32>
    %cst_13 = arith.constant dense<0.000000e+00> : vector<2x1xf32>
    %28 = tpu.matmul %26, %27, %cst_13 {dimension_numbers = #tpu.dot_dimension_numbers<[1], [0], [0], [1], [0, 0, 1, 1], [], []>} : vector<2x4xf32>, vector<4x1xf32>, vector<2x1xf32> -> vector<2x1xf32>
    %29 = arith.addf %15, %28 : vector<2x1xf32>
    %30 = vector.extract_strided_slice %2 {offsets = [0, 0, 20], sizes = [2, 5, 4], strides = [1, 1, 1]} : vector<2x8x36xf32> to vector<2x5x4xf32>
    %31 = vector.extract_strided_slice %2 {offsets = [0, 1, 24], sizes = [2, 5, 4], strides = [1, 1, 1]} : vector<2x8x36xf32> to vector<2x5x4xf32>
    %32 = arith.addf %30, %31 : vector<2x5x4xf32>
    %33 = vector.extract_strided_slice %2 {offsets = [0, 2, 28], sizes = [2, 5, 4], strides = [1, 1, 1]} : vector<2x8x36xf32> to vector<2x5x4xf32>
    %34 = arith.addf %32, %33 : vector<2x5x4xf32>
    %35 = vector.extract_strided_slice %2 {offsets = [0, 3, 32], sizes = [2, 5, 4], strides = [1, 1, 1]} : vector<2x8x36xf32> to vector<2x5x4xf32>
    %36 = arith.addf %34, %35 : vector<2x5x4xf32>
    %cst_14 = arith.constant dense<0xFF800000> : vector<2x4xf32>
    %37 = vector.multi_reduction <maximumf>, %36, %cst_14 [1] : vector<2x5x4xf32> to vector<2x4xf32>
    %38 = vector.extract_strided_slice %3 {offsets = [0, 8], sizes = [1, 4], strides = [1, 1]} : vector<1x12xf32> to vector<1x4xf32>
    %39 = vector.broadcast %38 : vector<1x4xf32> to vector<2x4xf32>
    %40 = arith.addf %37, %39 : vector<2x4xf32>
    %cst_15 = arith.constant 0.000000e+00 : f32
    %41 = vector.broadcast %cst_15 : f32 to vector<2x4xf32>
    %42 = arith.maximumf %40, %41 : vector<2x4xf32>
    %43 = vector.extract_strided_slice %4 {offsets = [8, 0], sizes = [4, 1], strides = [1, 1]} : vector<12x1xf32> to vector<4x1xf32>
    %cst_16 = arith.constant dense<0.000000e+00> : vector<2x1xf32>
    %44 = tpu.matmul %42, %43, %cst_16 {dimension_numbers = #tpu.dot_dimension_numbers<[1], [0], [0], [1], [0, 0, 1, 1], [], []>} : vector<2x4xf32>, vector<4x1xf32>, vector<2x1xf32> -> vector<2x1xf32>
    %45 = arith.addf %29, %44 : vector<2x1xf32>
    %c0_17 = arith.constant 0 : index
    %c0_18 = arith.constant 0 : index
    %46 = vector.load %arg5[%c0_17, %c0_18] : memref<1x1xf32, #tpu.memory_space<vmem>>, vector<1x1xf32>
    %47 = vector.broadcast %46 : vector<1x1xf32> to vector<2x1xf32>
    %48 = arith.addf %45, %47 : vector<2x1xf32>
    %c0_19 = arith.constant 0 : index
    %c0_20 = arith.constant 0 : index
    %49 = vector.load %arg6[%c0_19, %c0_20] : memref<2x1xf32, #tpu.memory_space<vmem>>, vector<2x1xf32>
    tpu.vector_store %arg6[%c0_19, %c0_20], %48 {strides = array<i32>} : memref<2x1xf32, #tpu.memory_space<vmem>>, vector<2x1xf32>,
    return
  }
  func.func @transform_0(%arg0: i32) -> (i32, i32, i32) {
    %c0_i32 = arith.constant 0 : i32
    %c0_i32_0 = arith.constant 0 : i32
    %c0_i32_1 = arith.constant 0 : i32
    return %arg0, %c0_i32, %c0_i32_0 : i32, i32, i32
  }
  func.func @transform_1(%arg0: i32) -> (i32, i32) {
    %c0_i32 = arith.constant 0 : i32
    %c0_i32_0 = arith.constant 0 : i32
    %c0_i32_1 = arith.constant 0 : i32
    return %c0_i32, %c0_i32_0 : i32, i32
  }
  func.func @transform_2(%arg0: i32) -> (i32, i32) {
    %c0_i32 = arith.constant 0 : i32
    %c0_i32_0 = arith.constant 0 : i32
    %c0_i32_1 = arith.constant 0 : i32
    return %c0_i32, %c0_i32_0 : i32, i32
  }
  func.func @transform_3(%arg0: i32) -> (i32, i32) {
    %c0_i32 = arith.constant 0 : i32
    %c0_i32_0 = arith.constant 0 : i32
    %c0_i32_1 = arith.constant 0 : i32
    return %c0_i32, %c0_i32_0 : i32, i32
  }
  func.func @transform_4(%arg0: i32) -> (i32, i32) {
    %c0_i32 = arith.constant 0 : i32
    %c0_i32_0 = arith.constant 0 : i32
    %c0_i32_1 = arith.constant 0 : i32
    return %c0_i32, %c0_i32_0 : i32, i32
  }
  func.func @transform_5(%arg0: i32) -> (i32, i32) {
    %c0_i32 = arith.constant 0 : i32
    %c0_i32_0 = arith.constant 0 : i32
    return %arg0, %c0_i32 : i32, i32
  }
}

</mosaic_0001>

<bundles_post_ra>
// kernel: tpu_custom_call.1
= control target key start
LH: loop header
LB: loop body
LE: loop exit
PB: predicated region body
PF: predicated region fallthrough
CT: control target
= control target key end

     0   :  { %s683_s0 = inlined_call_operand.vmem [shape: f32[2,8,32], index: 0, kind: input, shape index: {}]   ;;  %s684_s1 = inlined_call_operand.hbm [shape: f32[32,36], index: 1, kind: input, shape index: {}]   ;;  %s685_s2 = inlined_call_operand.vmem [shape: f32[1,12], index: 2, kind: input, shape index: {}]   ;;  %s686_s3 = inlined_call_operand.vmem [shape: f32[12,1], index: 3, kind: input, shape index: {}]   ;;  %s687_s4 = inlined_call_operand.<no memory space> [shape: f32[1,1], index: 4, kind: input, shape index: {}]   ;;  %s688_s5 = inlined_call_operand.vmem [shape: f32[2,1], index: 5, kind: output, shape index: {}]  }
   0x1   :  { %v10_v0 = vstv %s687_s4 }
   0x2   :  { %11 = vst [vmem:[#allocation2] sm:$0x1] %v10_v0 }
   0x3   :  { %12 = vsyncpa [#allocation4], 0  ;;  %s579_s20 = smov [#allocation3]   ;;  %s555_s24 = scalar_lea.hbm %s684_s1, 512 }
   0x4   :  { %s20_s21 = sshll.u32 %s579_s20, 4  ;;  %p556_p0 = scmp.ne.s32.totalorder %s684_s1, %s555_s24  ;;  %s21_s21 = int_to_ptr.vmem [resolvable:$true] %s20_s21 }
   0x5   :  { %p559_p1 = scmp.lt.u32.totalorder %s555_s24, %s684_s1 }
   0x7   :  { %p561_p2 = pnand %p559_p1, %p556_p0 }
   0x9   :  { %564 = shalt.err (!%p561_p2)
}
   0xa   :  { %s565_s4 = scalar_lea.vmem %s21_s21, 512  ;;  %p570_p4 = scmp.lt.s32.totalorder %s21_s21, %s21_s21 }
   0xb   :  { %p566_p3 = scmp.ne.s32.totalorder %s21_s21, %s565_s4  ;;  %p571_p5 = scmp.lt.s32.totalorder %s565_s4, %s565_s4 }
   0xd   :  { %p572_p6 = por %p571_p5, %p570_p4 }
   0xf   :  { %p573_p7 = pnand %p572_p6, %p566_p3 }
  0x11   :  { %576 = shalt.err (!%p573_p7)
}
  0x12   :  { %s580_s29 = smov 128   ;;  %s581_s30 = smov 8  }
  0x13   :  { %26 = dma.hbm_to_vmem [thread:$0]  %s684_s1, 512, %s21_s21, [#allocation4], %s580_s29, %s580_s29, %s581_s30  }
  0x14   :  { %577 = dma.done.wait [#allocation4], 512  }
  0x15   :  { %578 = vsyncadd [#allocation4], 4294966784  ;;  %vm42_vm0 = vcmask 261120   ;;  %v38_v1 = vld [vmem:[#allocation3] sm:$0xff]  ;;  %v39_v2 = vld [vmem:[#allocation3 + $0x8] sm:$0xff]  ;;  %s582_s11 = smov 120  }
  0x16   :  { %v40_v3 = vld [vmem:[#allocation3 + $0x10] sm:$0xff]  ;;  %v536_v4 = vpack.c.bf16 %v39_v2, %v38_v1  ;;  %v41_v5 = vld [vmem:[#allocation3 + $0x18] sm:$0xff]  ;;  %v37_v8 = vld [vmem:[%s683_s0 + $0x8] sm:$0xff]  ;;  %s583_s12 = smov 124   ;;  %s584_s13 = smov 116   ;;  %vm208_vm1 = vcmask 1043456  }
  0x17   :  { %v36_v6 = vld [vmem:[%s683_s0] sm:$0xff]  ;;  %v540_v7 = vpack.c.bf16 %v41_v5, %v40_v3  ;;  %s585_s15 = smov 4   ;;  %s586_s16 = smov 12   ;;  %v587_v19 = vmov 0.0   ;;  %vm588_vm2 = vmmov 0   ;;  %vm139_vm3 = vcmask 30720  }
  0x18   :  { %518 = vmatprep.mubr.msk.f32.mxu0 %vm42_vm0, %v36_v6  ;;  %537 = vmatprep.subr.bf16.mxu0 %v536_v4  ;;  %v646_v17 = vld [vmem:[%s685_s2] ss:$0 sm:$0xff]  ;;  %vm174_vm4 = vcmask 95296   ;;  %vm369_vm5 = vcmask 192672   ;;  %vm199_vm6 = vcmask 1041409   ;;  %s589_s2 = smov 108  }
  0x19   :  { %539 = vmatpush3.bf16.msra.mxu0 %v536_v4  ;;  %v653_v18 = vld [vmem:[%s686_s3] sm:$0xff]  ;;  %521 = vmatprep.subr.mxu1 %v587_v19  ;;  %vm205_vm7 = vcmask 31744   ;;  %vm481_vm8 = vcmask 1024  }
  0x1a   :  { %541 = vmatprep.subr.bf16.mxu0 %v540_v7  ;;  %v204_v20 = vrot.slane %v653_v18, 4  ;;  %523 = vmatprep.mubr.msk.f32.mxu1 %vm588_vm2, %v587_v19 }
  0x1c   :  { %522 = vmatpush3.msk.msra.mxu1 %vm208_vm1, %v204_v20 }
  0x1d   :  { %543 = vmatpush3.bf16.msra.mxu0 %v540_v7  ;;  %526 = vmatprep.subr.mxu1 %v587_v19 }
  0x20   :  { %519 = vmatmul.mubr.msk.f32.vlgmr.msra.gmra.mrb[0].mxu0 %vm42_vm0, %v37_v8 }
  0xf3   :  { %v520_v9 = vpop.f32.mrb[0].mxu0 }
  0xf4   :  { %v115_v10 = vpop.f32.mrb[1].mxu0  ;;  %v165_v11 = vrot.slane %v520_v9, 2  ;;  %v130_v12 = vrot.slane %v520_v9, 1  ;;  %v360_v16 = vrot.slane %v520_v9, 3 }
  0xf5   :  { %v129_v13 = vrot.slane %v115_v10, 1  ;;  %v164_v14 = vrot.slane %v115_v10, 2  ;;  %v359_v15 = vrot.slane %v115_v10, 3 }
  0xf6   :  { %168 = vrot.lane.b32.xlu1 %v165_v11, %s582_s11  ;;  %133 = vrot.lane.b32.xlu0 %v130_v12, %s583_s12 }
  0xfa   :  { %166 = vrot.lane.b32.xlu1 %v164_v14, %s582_s11  ;;  %131 = vrot.lane.b32.xlu0 %v129_v13, %s583_s12 }
  0xfe   :  { %361 = vrot.lane.b32.xlu1 %v359_v15, %s584_s13  ;;  %363 = vrot.lane.b32.xlu0 %v360_v16, %s584_s13 }
 0x102   :  { %189 = vrot.lane.b32.xlu0 %v646_v17, %s585_s15  ;;  %384 = vrot.lane.b32.xlu1 %v646_v17, %s586_s16 }
 0x168   :  { %v169_v21 = vpop.permute.xlu1 %168  ;;  %v134_v22 = vpop.permute.xlu0 %133 }
 0x169   :  { %v138_v23 = vadd.f32 %v520_v9, %v134_v22 }
 0x16b   :  { %v147_v24 = vsel %vm139_vm3, %v138_v23, -inf  ;;  %v173_v25 = vadd.f32 %v169_v21, %v138_v23 }
 0x16c   :  { %v148_v26 = vrot.slane %v147_v24, 4  ;;  %v167_v27 = vpop.permute.xlu1 %166  ;;  %v132_v28 = vpop.permute.xlu0 %131 }
 0x16d   :  { %v137_v29 = vadd.f32 %v132_v28, %v115_v10  ;;  %v182_v30 = vsel %vm174_vm4, %v173_v25, -inf }
 0x16e   :  { %v149_v31 = vmax.f32 %v147_v24, %v148_v26  ;;  %v183_v32 = vrot.slane %v182_v30, 4 }
 0x16f   :  { %v140_v33 = vsel %vm139_vm3, %v137_v29, -inf  ;;  %v172_v34 = vadd.f32 %v167_v27, %v137_v29 }
 0x170   :  { %v150_v35 = vrot.slane %v149_v31, 2  ;;  %v141_v36 = vrot.slane %v140_v33, 4  ;;  %v362_v37 = vpop.permute.xlu1 %361  ;;  %v184_v38 = vmax.f32 %v182_v30, %v183_v32  ;;  %v364_v39 = vpop.permute.xlu0 %363 }
 0x171   :  { %v175_v40 = vsel %vm174_vm4, %v172_v34, -inf  ;;  %v367_v41 = vadd.f32 %v362_v37, %v172_v34  ;;  %v368_v42 = vadd.f32 %v364_v39, %v173_v25  ;;  %v126_v34 = vld [vmem:[%s686_s3 + $0x8] sm:$0xf] }
 0x172   :  { %v151_v43 = vmax.f32 %v149_v31, %v150_v35  ;;  %v142_v44 = vmax.f32 %v140_v33, %v141_v36  ;;  %v176_v45 = vrot.slane %v175_v40, 4  ;;  %v185_v46 = vrot.slane %v184_v38, 2 }
 0x173   :  { %v370_v47 = vsel %vm369_vm5, %v367_v41, -inf  ;;  %v377_v48 = vsel %vm369_vm5, %v368_v42, -inf  ;;  %v497_v41 = vld [vmem:[#allocation2] ss:$0 sm:$0xff] }
 0x174   :  { %v152_v49 = vrot.slane %v151_v43, 1  ;;  %v143_v50 = vrot.slane %v142_v44, 2  ;;  %v177_v51 = vmax.f32 %v175_v40, %v176_v45  ;;  %v371_v52 = vrot.slane %v370_v47, 4  ;;  %v190_v1 = vpop.permute.xlu0 %189  ;;  %v385_v20 = vpop.permute.xlu1 %384 }
 0x175   :  { %v378_v53 = vrot.slane %v377_v48, 4  ;;  %v186_v54 = vmax.f32 %v184_v38, %v185_v46 }
 0x176   :  { %v153_v55 = vmax.f32 %v151_v43, %v152_v49  ;;  %v144_v56 = vmax.f32 %v142_v44, %v143_v50  ;;  %v178_v57 = vrot.slane %v177_v51, 2  ;;  %v372_v58 = vmax.f32 %v370_v47, %v371_v52 }
 0x177   :  { %v379_v59 = vmax.f32 %v377_v48, %v378_v53  ;;  %v187_v60 = vrot.slane %v186_v54, 1 }
 0x178   :  { %v161_v61 = vadd.f32 %v646_v17, %v153_v55  ;;  %v145_v62 = vrot.slane %v144_v56, 1  ;;  %v373_v63 = vrot.slane %v372_v58, 2  ;;  %v179_v0 = vmax.f32 %v177_v51, %v178_v57 }
 0x179   :  { %v380_v2 = vrot.slane %v379_v59, 2  ;;  %v188_v3 = vmax.f32 %v186_v54, %v187_v60 }
 0x17a   :  { %v163_v4 = vmax.f32 %v161_v61, 0.0  ;;  %v146_v5 = vmax.f32 %v144_v56, %v145_v62  ;;  %v374_v6 = vmax.f32 %v372_v58, %v373_v63  ;;  %v180_v7 = vrot.slane %v179_v0, 1 }
 0x17b   :  { %v381_v8 = vmax.f32 %v379_v59, %v380_v2  ;;  %v193_v9 = vadd.f32 %v190_v1, %v188_v3 }
 0x17c   :  { %v160_v10 = vadd.f32 %v646_v17, %v146_v5  ;;  %v181_v11 = vmax.f32 %v179_v0, %v180_v7  ;;  %v375_v12 = vrot.slane %v374_v6, 1  ;;  %v283_v22 = vrot.slane %v163_v4, 7 }
 0x17d   :  { %v195_v13 = vmax.f32 %v193_v9, 0.0  ;;  %v382_v14 = vrot.slane %v381_v8, 1 }
 0x17e   :  { %v162_v15 = vmax.f32 %v160_v10, 0.0  ;;  %v192_v16 = vadd.f32 %v190_v1, %v181_v11  ;;  %v376_v21 = vmax.f32 %v374_v6, %v375_v12 }
 0x17f   :  { %v383_v23 = vmax.f32 %v381_v8, %v382_v14  ;;  %v198_v25 = vrot.slane %v195_v13, 7 }
 0x180   :  { %v194_v24 = vmax.f32 %v192_v16, 0.0  ;;  %v284_v26 = vsel %vm199_vm6, %v283_v22, %v162_v15  ;;  %v387_v27 = vadd.f32 %v385_v20, %v376_v21 }
 0x181   :  { %v388_v28 = vadd.f32 %v385_v20, %v383_v23 }
 0x182   :  { %v200_v29 = vsel %vm199_vm6, %v198_v25, %v194_v24  ;;  %v389_v30 = vmax.f32 %v387_v27, 0.0 }
 0x183   :  { %v390_v17 = vmax.f32 %v388_v28, 0.0  ;;  %201 = vrot.lane.b32.xlu0 %v200_v29, %s582_s11 }
 0x185   :  { %v393_v31 = vrot.slane %v390_v17, 7 }
 0x187   :  { %v394_v32 = vsel %vm199_vm6, %v393_v31, %v389_v30 }
 0x188   :  { %395 = vrot.lane.b32.xlu1 %v394_v32, %s589_s2 }
 0x1f5   :  { %v202_v33 = vpop.permute.xlu0 %201 }
 0x1f6   :  { %524 = vmatmul.mubr.msk.f32.vlgmr.msra.gmra.mrb[0].mxu1 %vm205_vm7, %v202_v33 }
 0x1f7   :  { %527 = vmatpush3.msk.msra.mxu1 %vm208_vm1, %v653_v18  ;;  %528 = vmatprep.mubr.msk.f32.mxu1 %vm588_vm2, %v587_v19 }
 0x1f8   :  { %531 = vmatprep.subr.mxu1 %v587_v19 }
 0x1fa   :  { %529 = vmatmul.mubr.msk.f32.vlgmr.msra.gmra.mrb[2].mxu1 %vm205_vm7, %v284_v26  ;;  %v396_v35 = vpop.permute.xlu1 %395 }
 0x1fb   :  { %532 = vmatpush3.msk.msra.mxu1 %vm208_vm1, %v126_v34  ;;  %533 = vmatprep.mubr.msk.f32.mxu1 %vm588_vm2, %v587_v19 }
 0x1fe   :  { %534 = vmatmul.mubr.msk.f32.vlgmr.msra.gmra.mrb[4].mxu1 %vm205_vm7, %v396_v35 }
 0x2c9   :  { %v277_v36 = vpop.f32.mrb[0].mxu1 }
 0x2ca   :  { %v525_v37 = vpop.f32.mrb[1].mxu1 }
 0x2cd   :  { %v355_v18 = vpop.f32.mrb[2].mxu1 }
 0x2ce   :  { %v356_v38 = vadd.f32 %v355_v18, %v277_v36  ;;  %v530_v39 = vpop.f32.mrb[3].mxu1 }
 0x2d1   :  { %v468_v40 = vpop.f32.mrb[4].mxu1 }
 0x2d2   :  { %v472_v42 = vadd.f32 %v468_v40, %v356_v38  ;;  %v535_v43 = vpop.f32.mrb[5].mxu1 }
 0x2d4   :  { %v480_v44 = vadd.f32 %v497_v41, %v472_v42 }
 0x2d6   :  { %482 = vst.msk [vmem:[%s688_s5] sm:$0x3] %vm481_vm8, %v480_v44 }
 0x2d7   :  { %487 = vsyncpa [#allocation4], 1 }

</bundles_post_ra>
